<compile_context>
chip_gen: v5e
topology: v5e:2x2
jax: 0.10.0
libtpu: 0.0.40
codegen_flags: <defaults>
</compile_context>

<pallas_src>
import functools

import jax
import jax.numpy as jnp
from jax.experimental import pallas as pl
from jax.experimental.pallas import tpu as pltpu


def _cdiv(a: int, b: int) -> int:
    return (a + b - 1) // b


def _round_up(n: int, m: int) -> int:
    return _cdiv(n, m) * m


def _tpu_vmem_and_cores():
    """Best-effort query of per-TensorCore VMEM capacity and TensorCore count."""
    vmem = 64 * 1024 * 1024          # conservative fallback (v7x-sized)
    cores = 0
    try:
        info = pltpu.get_tpu_info()
        vmem = int(getattr(info, "vmem_capacity_bytes", vmem) or vmem)
        for attr in ("num_cores", "tensorcores_per_chip", "core_count"):
            val = getattr(info, attr, None)
            if val:
                cores = int(val)
                break
    except Exception:
        pass
    if cores <= 0:
        # Heuristic: 64 MiB/TensorCore chips (v7x) have 2 TensorCores per chip.
        cores = 2 if vmem <= 64 * 1024 * 1024 else 1
    return vmem, cores


def _choose_tiles(B, D, H, *, tb_max, th_max, cb, ob, eb, use_acc):
    """Pick (tb, th) that fit the chip's VMEM while minimizing padding."""
    Dp = _round_up(D, 128)
    Hp0 = _round_up(H, 128)

    # Sublane multiple for the packed compute dtype (f32: 8, bf16: 16, 8-bit: 32).
    sub = 8 if cb >= 4 else (16 if cb == 2 else 32)

    vmem_cap, cores = _tpu_vmem_and_cores()
    budget = int(vmem_cap * 0.85)                    # leave compiler-scratch headroom

    # ---- batch tile: minimize padding, favour large tb -----------------------
    n_b = max(1, _cdiv(B, max(tb_max, sub)))
    if cores >= 2 and n_b == 1 and B >= 2 * sub:
        n_b = 2                                      # shard the "parallel" axis over both TCs
    tb = _round_up(_cdiv(B, n_b), sub)

    # ---- hidden tile: largest tile <= th_max keeping the minimum tile count --
    th_cap = max(128, min(_round_up(th_max, 128), Hp0))
    th = _round_up(_cdiv(Hp0, _cdiv(Hp0, th_cap)), 128)

    def footprint(tb_, th_):
        f = 2 * (tb_ * Dp * cb          # x tile (double-buffered)
                 + Dp * th_ * cb        # W_enc^T tile
                 + th_ * Dp * cb        # W_dec^T tile
                 + (th_ + Dp) * 4       # biases (f32)
                 + tb_ * th_ * eb       # encoded output tile
                 + tb_ * Dp * ob)       # decoded output tile
        if use_acc:
            f += tb_ * Dp * 4           # f32 decoder accumulator (single buffer)
        return f

    # Shrink until the working set fits.  Prefer shrinking th: both weight
    # matrices are re-streamed once per batch tile, so a large tb halves weight
    # HBM traffic and keeps the kernel MXU-bound on all generations.
    while footprint(tb, th) > budget:
        if th > 128:
            th -= 128
            th = _round_up(_cdiv(Hp0, _cdiv(Hp0, th)), 128)   # re-tighten padding
        elif tb > sub:
            n_b += 1
            tb = _round_up(_cdiv(B, n_b), sub)
        else:
            break  # smallest legal tiles; pathological D — let the compiler try

    Bp = _cdiv(B, tb) * tb
    Hp = _cdiv(Hp0, th) * th
    return tb, th, Bp, Hp, Dp, vmem_cap


def _sae_kernel(x_ref, we_ref, be_ref, wd_ref, bd_ref, dec_ref, enc_ref, *scratch):
    """One (batch-tile i, hidden-tile j) grid step.

    Encoder tile:  h = ReLU(x[i] @ We[:, j] + be[j])  ->  enc[i, j]
    Decoder:       acc[i] (+)= h @ Wd[j, :]  with b_dec added once at j == 0.
    acc is dec_ref itself when the output dtype is f32 (resident across j),
    otherwise an f32 VMEM scratch cast into dec_ref at the last hidden tile.
    """
    acc_ref = scratch[0] if scratch else dec_ref
    j = pl.program_id(1)

    # Encoder: [tb, Dp] @ [Dp, th] on the MXU with f32 accumulation.
    h = jnp.dot(x_ref[...], we_ref[...], preferred_element_type=jnp.float32)
    h = jnp.maximum(h + be_ref[...], 0.0)            # bias + ReLU in f32
    enc_ref[...] = h.astype(enc_ref.dtype)

    # Decoder partial product for this hidden tile: [tb, th] @ [th, Dp].
    part = jnp.dot(h.astype(wd_ref.dtype), wd_ref[...],
                   preferred_element_type=jnp.float32)

    @pl.when(j == 0)
    def _init():
        acc_ref[...] = part + bd_ref[...]            # b_dec added exactly once

    @pl.when(j > 0)
    def _accumulate():
        acc_ref[...] = acc_ref[...] + part

    if scratch:  # separate f32 accumulator -> cast into the output once
        @pl.when(j == pl.num_programs(1) - 1)
        def _finalize():
            dec_ref[...] = acc_ref[...].astype(dec_ref.dtype)


def sparse_autoencoder_forward(x, w_enc, b_enc, w_dec, b_dec, *,
                               tb_max=512, th_max=2048,
                               compute_dtype=jnp.bfloat16,
                               encoded_dtype=None):
    """Fused SAE forward.

    x: [B, D]; w_enc: [H, D]; b_enc: [H]; w_dec: [D, H]; b_dec: [D].
    Returns (decoded [B, D], encoded [B, H]).  `encoded_dtype=jnp.bfloat16` can
    be used to halve the dominant encoded writeback traffic (default keeps
    x.dtype to match the PyTorch module).
    """
    B, D = x.shape
    H, D2 = w_enc.shape
    assert D2 == D and w_dec.shape == (D, H) and b_enc.shape == (H,) and b_dec.shape == (D,)

    out_dtype = jnp.dtype(x.dtype)
    enc_dtype = out_dtype if encoded_dtype is None else jnp.dtype(encoded_dtype)
    cb = jnp.dtype(compute_dtype).itemsize
    ob = out_dtype.itemsize
    eb = enc_dtype.itemsize
    use_acc = out_dtype != jnp.dtype(jnp.float32)    # scratch only for narrow outputs

    tb, th, Bp, Hp, Dp, vmem_cap = _choose_tiles(
        B, D, H, tb_max=tb_max, th_max=th_max, cb=cb, ob=ob, eb=eb, use_acc=use_acc)

    # ---- pad + cast operands (zero padding is exact for this computation) ----
    xe = x.astype(compute_dtype)
    if (Bp, Dp) != (B, D):
        xe = jnp.pad(xe, ((0, Bp - B), (0, Dp - D)))
    we_t = jnp.pad(w_enc.T.astype(compute_dtype), ((0, Dp - D), (0, Hp - H)))
    wd_t = jnp.pad(w_dec.T.astype(compute_dtype), ((0, Hp - H), (0, Dp - D)))
    be = jnp.pad(b_enc.astype(jnp.float32), (0, Hp - H)).reshape(1, Hp)
    bd = jnp.pad(b_dec.astype(jnp.float32), (0, Dp - D)).reshape(1, Dp)

    grid = (Bp // tb, Hp // th)
    scratch_shapes = [pltpu.VMEM((tb, Dp), jnp.float32)] if use_acc else []

    cost = pl.CostEstimate(
        flops=4 * Bp * Dp * Hp,                       # encoder + decoder matmuls
        transcendentals=0,
        bytes_accessed=int(Bp * Dp * cb                       # x read
                           + grid[0] * 2 * Dp * Hp * cb       # weights per batch tile
                           + Bp * Hp * eb + Bp * Dp * ob),    # outputs
    )

    decoded_p, encoded_p = pl.pallas_call(
        _sae_kernel,
        out_shape=(jax.ShapeDtypeStruct((Bp, Dp), out_dtype),   # decoded (padded)
                   jax.ShapeDtypeStruct((Bp, Hp), enc_dtype)),  # encoded (padded)
        grid_spec=pltpu.PrefetchScalarGridSpec(
            num_scalar_prefetch=0,
            grid=grid,
            in_specs=[
                pl.BlockSpec((tb, Dp), lambda i, j: (i, 0)),   # x tile (held across j)
                pl.BlockSpec((Dp, th), lambda i, j: (0, j)),   # W_enc^T tile
                pl.BlockSpec((1, th), lambda i, j: (0, j)),    # b_enc tile
                pl.BlockSpec((th, Dp), lambda i, j: (j, 0)),   # W_dec^T tile
                pl.BlockSpec((1, Dp), lambda i, j: (0, 0)),    # b_dec
            ],
            out_specs=[
                pl.BlockSpec((tb, Dp), lambda i, j: (i, 0)),   # decoded (resident over j)
                pl.BlockSpec((tb, th), lambda i, j: (i, j)),   # encoded
            ],
            scratch_shapes=scratch_shapes,
        ),
        compiler_params=pltpu.CompilerParams(
            dimension_semantics=("parallel", "arbitrary"),
            vmem_limit_bytes=int(vmem_cap * 7 // 8),   # ~112 MiB v5e/v6e, ~56 MiB v7x
        ),
        cost_estimate=cost,
    )(xe, we_t, be, wd_t, bd)

    return decoded_p[:B, :D], encoded_p[:B, :H]


def _reference(x, w_enc, b_enc, w_dec, b_dec):
    hp = jax.lax.Precision.HIGHEST
    x = x.astype(jnp.float32)
    enc = jnp.maximum(jnp.dot(x, w_enc.T, precision=hp) + b_enc, 0.0)
    dec = jnp.dot(enc, w_dec.T, precision=hp) + b_dec
    return dec, enc


def _make_params(key, D, H):
    k1, k2, k3, k4 = jax.random.split(key, 4)
    be = 1.0 / D ** 0.5
    bd = 1.0 / H ** 0.5
    w_enc = jax.random.uniform(k1, (H, D), jnp.float32, -be, be)
    b_enc = jax.random.uniform(k2, (H,), jnp.float32, -be, be)
    w_dec = jax.random.uniform(k3, (D, H), jnp.float32, -bd, bd)
    b_dec = jax.random.uniform(k4, (D,), jnp.float32, -bd, bd)
    return w_enc, b_enc, w_dec, b_dec


if __name__ == "__main__":
    key = jax.random.PRNGKey(0)

    # ---- case 1: small shapes consistent with the module (batch=8, in=64, hidden=32)
    kx, kp = jax.random.split(key)
    B, D, H = 8, 64, 32
    x = jax.random.normal(kx, (B, D), dtype=jnp.float32)
    w_enc, b_enc, w_dec, b_dec = _make_params(kp, D, H)
    ref_dec, ref_enc = _reference(x, w_enc, b_enc, w_dec, b_dec)

    fwd_f32 = jax.jit(functools.partial(sparse_autoencoder_forward,
                                        compute_dtype=jnp.float32))
    dec32, enc32 = fwd_f32(x, w_enc, b_enc, w_dec, b_dec)
    jax.block_until_ready((dec32, enc32))
    assert dec32.shape == (B, D) and enc32.shape == (B, H)
    assert jnp.allclose(dec32, ref_dec, atol=1e-2, rtol=1e-2)
    assert jnp.allclose(enc32, ref_enc, atol=1e-2, rtol=1e-2)

    fwd_bf16 = jax.jit(sparse_autoencoder_forward)          # bf16 MXU, f32 accumulation
    dec16, enc16 = fwd_bf16(x, w_enc, b_enc, w_dec, b_dec)
    jax.block_until_ready((dec16, enc16))
    assert jnp.allclose(dec16, ref_dec, atol=5e-2, rtol=5e-2)
    assert jnp.allclose(enc16, ref_enc, atol=5e-2, rtol=5e-2)

    # ---- case 2: ragged shapes + forced multi-tile grid (exercises the hidden-dim
    # accumulation, batch/hidden padding, and the f32 accumulate-in-output path).
    kx2, kp2 = jax.random.split(kp)
    B2, D2, H2 = 23, 72, 200
    x2 = jax.random.normal(kx2, (B2, D2), dtype=jnp.float32)
    w_enc2, b_enc2, w_dec2, b_dec2 = _make_params(kp2, D2, H2)
    ref_dec2, ref_enc2 = _reference(x2, w_enc2, b_enc2, w_dec2, b_dec2)

    fwd_tiled = jax.jit(functools.partial(sparse_autoencoder_forward,
                                          tb_max=16, th_max=128))
    dec2, enc2 = fwd_tiled(x2, w_enc2, b_enc2, w_dec2, b_dec2)
    jax.block_until_ready((dec2, enc2))
    assert dec2.shape == (B2, D2) and enc2.shape == (B2, H2)
    assert jnp.allclose(dec2, ref_dec2, atol=5e-2, rtol=5e-2)
    assert jnp.allclose(enc2, ref_enc2, atol=5e-2, rtol=5e-2)

    # ---- case 3: bf16 inputs/outputs (exercises the f32 scratch-accumulator path).
    x2_bf16 = x2.astype(jnp.bfloat16)
    ref_dec3, ref_enc3 = _reference(x2_bf16, w_enc2, b_enc2, w_dec2, b_dec2)
    dec3, enc3 = fwd_tiled(x2_bf16, w_enc2, b_enc2, w_dec2, b_dec2)
    jax.block_until_ready((dec3, enc3))
    assert dec3.dtype == jnp.bfloat16 and enc3.dtype == jnp.bfloat16
    assert jnp.allclose(dec3.astype(jnp.float32), ref_dec3, atol=5e-2, rtol=5e-2)
    assert jnp.allclose(enc3.astype(jnp.float32), ref_enc3, atol=5e-2, rtol=5e-2)

    print("KERNEL_OK")
</pallas_src>

<mosaic_0001>
module attributes {stable_mosaic.version = 11 : i64} {
  func.func @_sae_kernel(%arg0: i32, %arg1: i32, %arg2: memref<8x128xf32, #tpu.memory_space<vmem>>, %arg3: memref<128x128xf32, #tpu.memory_space<vmem>>, %arg4: memref<1x128xf32, #tpu.memory_space<vmem>>, %arg5: memref<128x128xf32, #tpu.memory_space<vmem>>, %arg6: memref<1x128xf32, #tpu.memory_space<vmem>>, %arg7: memref<8x128xf32, #tpu.memory_space<vmem>>, %arg8: memref<8x128xf32, #tpu.memory_space<vmem>>) attributes {dimension_semantics = [#tpu.dimension_semantics<parallel>, #tpu.dimension_semantics<arbitrary>], iteration_bounds = array<i64: 1, 1>, scalar_prefetch = 0 : i64, scratch_operands = 0 : i64, tpu.core_type = #tpu.core_type<tc>, window_params = [{transform_indices = @transform_0, window_bounds = array<i64: 8, 128>}, {transform_indices = @transform_1, window_bounds = array<i64: 128, 128>}, {transform_indices = @transform_2, window_bounds = array<i64: 1, 128>}, {transform_indices = @transform_3, window_bounds = array<i64: 128, 128>}, {pipeline_mode = #tpu.pipeline_mode<synchronous>, transform_indices = @transform_4, window_bounds = array<i64: 1, 128>}, {transform_indices = @transform_5, window_bounds = array<i64: 8, 128>}, {transform_indices = @transform_6, window_bounds = array<i64: 8, 128>}]} {
    %c0 = arith.constant 0 : index
    %c0_0 = arith.constant 0 : index
    %0 = vector.load %arg2[%c0, %c0_0] : memref<8x128xf32, #tpu.memory_space<vmem>>, vector<8x128xf32>
    %c0_1 = arith.constant 0 : index
    %c0_2 = arith.constant 0 : index
    %1 = vector.load %arg3[%c0_1, %c0_2] : memref<128x128xf32, #tpu.memory_space<vmem>>, vector<128x128xf32>
    %cst = arith.constant dense<0.000000e+00> : vector<8x128xf32>
    %2 = tpu.matmul %0, %1, %cst {dimension_numbers = #tpu.dot_dimension_numbers<[1], [0], [0], [1], [0, 0, 1, 1], [], []>} : vector<8x128xf32>, vector<128x128xf32>, vector<8x128xf32> -> vector<8x128xf32>
    %c0_3 = arith.constant 0 : index
    %c0_4 = arith.constant 0 : index
    %3 = vector.load %arg4[%c0_3, %c0_4] : memref<1x128xf32, #tpu.memory_space<vmem>>, vector<1x128xf32>
    %4 = vector.broadcast %3 : vector<1x128xf32> to vector<8x128xf32>
    %5 = arith.addf %2, %4 : vector<8x128xf32>
    %cst_5 = arith.constant 0.000000e+00 : f32
    %6 = vector.broadcast %cst_5 : f32 to vector<8x128xf32>
    %7 = arith.maximumf %5, %6 : vector<8x128xf32>
    %c0_6 = arith.constant 0 : index
    %c0_7 = arith.constant 0 : index
    %8 = vector.load %arg8[%c0_6, %c0_7] : memref<8x128xf32, #tpu.memory_space<vmem>>, vector<8x128xf32>
    tpu.vector_store %arg8[%c0_6, %c0_7], %7 {strides = array<i32>} : memref<8x128xf32, #tpu.memory_space<vmem>>, vector<8x128xf32>,
    %c0_8 = arith.constant 0 : index
    %c0_9 = arith.constant 0 : index
    %9 = vector.load %arg5[%c0_8, %c0_9] : memref<128x128xf32, #tpu.memory_space<vmem>>, vector<128x128xf32>
    %cst_10 = arith.constant dense<0.000000e+00> : vector<8x128xf32>
    %10 = tpu.matmul %7, %9, %cst_10 {dimension_numbers = #tpu.dot_dimension_numbers<[1], [0], [0], [1], [0, 0, 1, 1], [], []>} : vector<8x128xf32>, vector<128x128xf32>, vector<8x128xf32> -> vector<8x128xf32>
    %c0_i32 = arith.constant 0 : i32
    %11 = arith.cmpi eq, %arg1, %c0_i32 : i32
    %12 = arith.extui %11 : i1 to i32
    %c0_i32_11 = arith.constant 0 : i32
    %13 = arith.cmpi ne, %12, %c0_i32_11 : i32
    scf.if %13 {
      %c0_14 = arith.constant 0 : index
      %c0_15 = arith.constant 0 : index
      %17 = vector.load %arg6[%c0_14, %c0_15] : memref<1x128xf32, #tpu.memory_space<vmem>>, vector<1x128xf32>
      %18 = vector.broadcast %17 : vector<1x128xf32> to vector<8x128xf32>
      %19 = arith.addf %10, %18 : vector<8x128xf32>
      %c0_16 = arith.constant 0 : index
      %c0_17 = arith.constant 0 : index
      %20 = vector.load %arg7[%c0_16, %c0_17] : memref<8x128xf32, #tpu.memory_space<vmem>>, vector<8x128xf32>
      tpu.vector_store %arg7[%c0_16, %c0_17], %19 {strides = array<i32>} : memref<8x128xf32, #tpu.memory_space<vmem>>, vector<8x128xf32>,
    } else {
    }
    %c0_i32_12 = arith.constant 0 : i32
    %14 = arith.cmpi sgt, %arg1, %c0_i32_12 : i32
    %15 = arith.extui %14 : i1 to i32
    %c0_i32_13 = arith.constant 0 : i32
    %16 = arith.cmpi ne, %15, %c0_i32_13 : i32
    scf.if %16 {
      %c0_14 = arith.constant 0 : index
      %c0_15 = arith.constant 0 : index
      %17 = vector.load %arg7[%c0_14, %c0_15] : memref<8x128xf32, #tpu.memory_space<vmem>>, vector<8x128xf32>
      %18 = arith.addf %17, %10 : vector<8x128xf32>
      %c0_16 = arith.constant 0 : index
      %c0_17 = arith.constant 0 : index
      %19 = vector.load %arg7[%c0_16, %c0_17] : memref<8x128xf32, #tpu.memory_space<vmem>>, vector<8x128xf32>
      tpu.vector_store %arg7[%c0_16, %c0_17], %18 {strides = array<i32>} : memref<8x128xf32, #tpu.memory_space<vmem>>, vector<8x128xf32>,
    } else {
    }
    return
  }
  func.func @transform_0(%arg0: i32, %arg1: i32) -> (i32, i32) {
    %c0_i32 = arith.constant 0 : i32
    %c0_i32_0 = arith.constant 0 : i32
    return %arg0, %c0_i32 : i32, i32
  }
  func.func @transform_1(%arg0: i32, %arg1: i32) -> (i32, i32) {
    %c0_i32 = arith.constant 0 : i32
    %c0_i32_0 = arith.constant 0 : i32
    return %c0_i32, %arg1 : i32, i32
  }
  func.func @transform_2(%arg0: i32, %arg1: i32) -> (i32, i32) {
    %c0_i32 = arith.constant 0 : i32
    %c0_i32_0 = arith.constant 0 : i32
    return %c0_i32, %arg1 : i32, i32
  }
  func.func @transform_3(%arg0: i32, %arg1: i32) -> (i32, i32) {
    %c0_i32 = arith.constant 0 : i32
    %c0_i32_0 = arith.constant 0 : i32
    return %arg1, %c0_i32 : i32, i32
  }
  func.func @transform_4(%arg0: i32, %arg1: i32) -> (i32, i32) {
    %c0_i32 = arith.constant 0 : i32
    %c0_i32_0 = arith.constant 0 : i32
    %c0_i32_1 = arith.constant 0 : i32
    return %c0_i32, %c0_i32_0 : i32, i32
  }
  func.func @transform_5(%arg0: i32, %arg1: i32) -> (i32, i32) {
    %c0_i32 = arith.constant 0 : i32
    %c0_i32_0 = arith.constant 0 : i32
    return %arg0, %c0_i32 : i32, i32
  }
  func.func @transform_6(%arg0: i32, %arg1: i32) -> (i32, i32) {
    %c0_i32 = arith.constant 0 : i32
    return %arg0, %arg1 : i32, i32
  }
}

</mosaic_0001>

<bundles_post_ra>
// kernel: sparse_autoencoder_forward.1
= control target key start
LH: loop header
LB: loop body
LE: loop exit
PB: predicated region body
PF: predicated region fallthrough
CT: control target
= control target key end

     0   :  { %12 = vsyncpa [#allocation3], 0  ;;  %s356_s0 = inlined_call_operand.vmem [shape: f32[8,128], index: 0, kind: input, shape index: {}]   ;;  %s357_s1 = inlined_call_operand.vmem [shape: f32[128,128], index: 1, kind: input, shape index: {}]   ;;  %s358_s2 = inlined_call_operand.vmem [shape: f32[1,128], index: 2, kind: input, shape index: {}]   ;;  %s359_s3 = inlined_call_operand.vmem [shape: f32[128,128], index: 3, kind: input, shape index: {}]   ;;  %s360_s4 = inlined_call_operand.vmem [shape: f32[1,128], index: 4, kind: input, shape index: {}]   ;;  %s361_s5 = inlined_call_operand.hbm [shape: f32[8,128], index: 5, kind: output, shape index: {0}]   ;;  %s362_s6 = inlined_call_operand.hbm [shape: f32[8,128], index: 6, kind: output, shape index: {1}]  }
   0x1   :  { %v40_v0 = vld [vmem:[%s357_s1 + $0x78] sm:$0xff]  ;;  %v39_v1 = vld [vmem:[%s357_s1 + $0x70] sm:$0xff]  ;;  %v38_v2 = vld [vmem:[%s357_s1 + $0x68] sm:$0xff] }
   0x2   :  { %45 = vmatpush.msra.mxu0 %v40_v0  ;;  %v37_v3 = vld [vmem:[%s357_s1 + $0x60] sm:$0xff]  ;;  %v82_v4 = vld [vmem:[%s359_s3 + $0x78] sm:$0xff]  ;;  %v81_v6 = vld [vmem:[%s359_s3 + $0x70] sm:$0xff] }
   0x3   :  { %v36_v5 = vld [vmem:[%s357_s1 + $0x58] sm:$0xff]  ;;  %83 = vmatpush.msra.mxu1 %v82_v4  ;;  %v80_v7 = vld [vmem:[%s359_s3 + $0x68] sm:$0xff]  ;;  %v35_v8 = vld [vmem:[%s357_s1 + $0x50] sm:$0xff] }
   0x4   :  { %46 = vmatpush.msra.mxu0 %v39_v1  ;;  %v79_v9 = vld [vmem:[%s359_s3 + $0x60] sm:$0xff]  ;;  %v34_v10 = vld [vmem:[%s357_s1 + $0x48] sm:$0xff]  ;;  %v78_v11 = vld [vmem:[%s359_s3 + $0x58] sm:$0xff] }
   0x5   :  { %84 = vmatpush.msra.mxu1 %v81_v6 }
   0x6   :  { %47 = vmatpush.msra.mxu0 %v38_v2 }
   0x7   :  { %85 = vmatpush.msra.mxu1 %v80_v7 }
   0x8   :  { %48 = vmatpush.msra.mxu0 %v37_v3 }
   0xa   :  { %49 = vmatpush.msra.mxu0 %v36_v5 }
   0xc   :  { %50 = vmatpush.msra.mxu0 %v35_v8 }
   0xd   :  { %13 = vsyncpa [#allocation5], 0  ;;  %v33_v12 = vld [vmem:[%s357_s1 + $0x40] sm:$0xff]  ;;  %86 = vmatpush.msra.mxu1 %v79_v9  ;;  %v77_v13 = vld [vmem:[%s359_s3 + $0x50] sm:$0xff]  ;;  %s208_s15 = smov [#allocation4]   ;;  %s138_s19 = sshll.u32 %s362_s6, 4  ;;  %s139_s19 = int_to_ptr.hbm [resolvable:$true] %s138_s19 }
   0xe   :  { %51 = vmatpush.msra.mxu0 %v34_v10  ;;  %v32_v14 = vld [vmem:[%s357_s1 + $0x38] sm:$0xff]  ;;  %v76_v15 = vld [vmem:[%s359_s3 + $0x48] sm:$0xff]  ;;  %v31_v16 = vld [vmem:[%s357_s1 + $0x30] sm:$0xff]  ;;  %s136_s16 = sshll.u32 %s208_s15, 4  ;;  %s209_s21 = smov [#allocation2]   ;;  %s137_s16 = int_to_ptr.vmem [resolvable:$true] %s136_s16 }
   0xf   :  { %87 = vmatpush.msra.mxu1 %v78_v11  ;;  %v75_v17 = vld [vmem:[%s359_s3 + $0x40] sm:$0xff]  ;;  %v30_v18 = vld [vmem:[%s357_s1 + $0x28] sm:$0xff]  ;;  %v74_v19 = vld [vmem:[%s359_s3 + $0x38] sm:$0xff]  ;;  %s127_s24 = sshll.u32 %s361_s5, 4  ;;  %s128_s24 = int_to_ptr.hbm [resolvable:$true] %s127_s24 }
  0x10   :  { %52 = vmatpush.msra.mxu0 %v33_v12  ;;  %v29_v20 = vld [vmem:[%s357_s1 + $0x20] sm:$0xff]  ;;  %v73_v21 = vld [vmem:[%s359_s3 + $0x30] sm:$0xff]  ;;  %v28_v22 = vld [vmem:[%s357_s1 + $0x18] sm:$0xff] }
  0x11   :  { %88 = vmatpush.msra.mxu1 %v77_v13  ;;  %v72_v23 = vld [vmem:[%s359_s3 + $0x28] sm:$0xff]  ;;  %v27_v24 = vld [vmem:[%s357_s1 + $0x10] sm:$0xff]  ;;  %v71_v25 = vld [vmem:[%s359_s3 + $0x20] sm:$0xff] }
  0x12   :  { %53 = vmatpush.msra.mxu0 %v32_v14  ;;  %v26_v26 = vld [vmem:[%s357_s1 + $0x8] sm:$0xff]  ;;  %v70_v27 = vld [vmem:[%s359_s3 + $0x18] sm:$0xff]  ;;  %v25_v28 = vld [vmem:[%s357_s1] sm:$0xff] }
  0x13   :  { %89 = vmatpush.msra.mxu1 %v76_v15  ;;  %v24_v29 = vld [vmem:[%s356_s0] sm:$0xff]  ;;  %v69_v30 = vld [vmem:[%s359_s3 + $0x10] sm:$0xff]  ;;  %v68_v31 = vld [vmem:[%s359_s3 + $0x8] sm:$0xff] }
  0x14   :  { %54 = vmatpush.msra.mxu0 %v31_v16  ;;  %v67_v32 = vld [vmem:[%s359_s3] sm:$0xff] }
  0x15   :  { %90 = vmatpush.msra.mxu1 %v75_v17  ;;  %v154_v33 = vld [vmem:[%s358_s2] ss:$0 sm:$0xff]  ;;  %s125_s2 = sshll.u32 %s209_s21, 4  ;;  %s126_s2 = int_to_ptr.vmem [resolvable:$true] %s125_s2 }
  0x16   :  { %55 = vmatpush.msra.mxu0 %v30_v18  ;;  %v155_v37 = vld [vmem:[%s360_s4] ss:$0 sm:$0xff] }
  0x17   :  { %91 = vmatpush.msra.mxu1 %v74_v19 }
  0x18   :  { %56 = vmatpush.msra.mxu0 %v29_v20 }
  0x19   :  { %92 = vmatpush.msra.mxu1 %v73_v21 }
  0x1a   :  { %57 = vmatpush.msra.mxu0 %v28_v22 }
  0x1b   :  { %93 = vmatpush.msra.mxu1 %v72_v23 }
  0x1c   :  { %58 = vmatpush.msra.mxu0 %v27_v24 }
  0x1d   :  { %94 = vmatpush.msra.mxu1 %v71_v25 }
  0x1e   :  { %59 = vmatpush.msra.mxu0 %v26_v26 }
  0x1f   :  { %95 = vmatpush.msra.mxu1 %v70_v27 }
  0x20   :  { %60 = vmatpush.msra.mxu0 %v25_v28 }
  0x21   :  { %61 = vmatmul.f32.vlgmr.msra.gmra.mxu0 %v24_v29  ;;  %96 = vmatpush.msra.mxu1 %v69_v30 }
  0x23   :  { %97 = vmatpush.msra.mxu1 %v68_v31 }
  0x25   :  { %98 = vmatpush.msra.mxu1 %v67_v32 }
  0x9e   :  { %v62_v34 = vpop.f32.mrf.mxu0 }
  0x9f   :  { %v63_v35 = vadd.f32 %v154_v33, %v62_v34 }
  0xa1   :  { %v65_v36 = vmax.f32 %v63_v35, 0.0 }
  0xa3   :  { %66 = vst [vmem:[#allocation4] sm:$0xff] %v65_v36  ;;  %99 = vmatmul.f32.vlgmr.msra.gmra.mxu1 %v65_v36 }
  0xa4   :  { %141 = dma.vmem_to_hbm [thread:$0]  %s137_s16, 128, %s139_s19, [#allocation5]  }
 0x120   :  { %v100_v38 = vpop.f32.mrf.mxu1 }
 0x121   :  { %v111_v39 = vadd.f32 %v155_v37, %v100_v38 }
 0x123   :  { %112 = vst [vmem:[#allocation2] sm:$0xff] %v111_v39 }
 0x124   :  { %130 = dma.vmem_to_hbm [thread:$0]  %s126_s2, 128, %s128_s24, [#allocation3]  }
 0x125   :  { %204 = dma.done.wait [#allocation3], 128  }
 0x126   :  { %205 = vsyncadd [#allocation3], 4294967168 }
 0x127   :  { %206 = dma.done.wait [#allocation5], 128  }
 0x128   :  { %207 = vsyncadd [#allocation5], 4294967168 }
 0x129   :  { %150 = vsyncpa [#allocation3], 1 }
 0x12a   :  { %151 = vsyncpa [#allocation5], 1 }

</bundles_post_ra>
